<compile_context>
chip_gen: v6e
topology: v6e:2x2x1
jax: 0.10.0
libtpu: 0.0.40
codegen_flags: <defaults>
</compile_context>

<pallas_src>
import functools

import jax
import jax.numpy as jnp
from jax import lax
from jax.experimental import pallas as pl
from jax.experimental.pallas import tpu as pltpu

LANE = 128          # lane width: pad narrow output dims up to this
HIDDEN = 64         # co hidden width
IN_FEATS = 19       # HumanConcepts2 feature width


def _round_up(x, m):
    return (x + m - 1) // m * m


# --------------------------------------------------------------------------
# Batched forward kernel: streamed over batch, weights resident in VMEM.
# All weights arrive pre-transposed to (in, out) and lane-padded where needed.
# --------------------------------------------------------------------------
def cbm_batch_kernel(h_ref, wsc_ref, bsc_ref, w1_ref, b1_ref, w2_ref, b2_ref,
                     w3_ref, b3_ref, c_ref, out_ref):
    h = h_ref[...]                                                  # (TB, 19)

    # concept bottleneck: c = sc(h)   -> lane-dense (TB, 128) store
    c = jnp.dot(h, wsc_ref[...], preferred_element_type=jnp.float32) + bsc_ref[...]
    c_ref[...] = c

    # co head: Linear-ReLU-Linear-ReLU-Linear
    x1 = jnp.maximum(
        jnp.dot(c, w1_ref[...], preferred_element_type=jnp.float32) + b1_ref[...],
        0.0)
    x2 = jnp.maximum(
        jnp.dot(x1, w2_ref[...], preferred_element_type=jnp.float32) + b2_ref[...],
        0.0)
    out_ref[...] = (
        jnp.dot(x2, w3_ref[...], preferred_element_type=jnp.float32) + b3_ref[...])


# --------------------------------------------------------------------------
# Weight-only losses: batch independent, computed once (tiny single-shot call).
# --------------------------------------------------------------------------
def weight_loss_kernel(wsc_ref, l1_ref, div_ref):
    w = wsc_ref[...]                                                # (concept, 19)

    # l1_loss = ||sc.weight||_1  (entrywise, matches torch.norm(w, p=1))
    l1_ref[...] = jnp.sum(jnp.abs(w), axis=(0, 1), keepdims=True)

    # diversity loss on row-normalized sc.weight (F.normalize p=2, dim=1,
    # eps=1e-12 semantics).
    row_norm = jnp.sqrt(jnp.sum(w * w, axis=1, keepdims=True))
    nw = w / jnp.maximum(row_norm, 1e-12)
    cs = lax.dot_general(
        nw, nw,
        dimension_numbers=(((1,), (1,)), ((), ())),
        preferred_element_type=jnp.float32,
    )                                                               # (concept, concept)
    n = cs.shape[0]
    rows = lax.broadcasted_iota(jnp.int32, (n, n), 0)
    cols = lax.broadcasted_iota(jnp.int32, (n, n), 1)
    cs = cs - (rows == cols).astype(cs.dtype)
    div_ref[...] = jnp.sum(cs * cs, axis=(0, 1), keepdims=True)


def human_concepts2(x):
    # TODO(synk): real HumanConcepts2 source unavailable; identity passthrough
    # assuming x already carries the 19 hand-crafted concept features.
    assert x.shape[-1] == IN_FEATS
    return x.astype(jnp.float32)


@functools.partial(jax.jit, static_argnames=("tb",))
def cbm_forward(x, params, *, tb=512):
    h = human_concepts2(x)
    wsc, bsc, w1, b1, w2, b2, w3, b3 = params
    concept = wsc.shape[0]
    out_size = w3.shape[0]
    assert concept <= LANE and out_size <= LANE
    B = h.shape[0]

    # One-time weight packing (fused under jit): transpose to (in, out) and
    # zero-pad output lanes to 128 so kernel stores are unmasked.
    wsc32 = wsc.astype(jnp.float32)
    wsc_t = jnp.zeros((IN_FEATS, LANE), jnp.float32).at[:, :concept].set(wsc32.T)
    bsc_p = jnp.zeros((1, LANE), jnp.float32).at[:, :concept].set(
        bsc.astype(jnp.float32).reshape(1, -1))
    w1_t = jnp.zeros((LANE, HIDDEN), jnp.float32).at[:concept, :].set(
        w1.T.astype(jnp.float32))
    b1_r = b1.reshape(1, HIDDEN).astype(jnp.float32)
    w2_t = w2.T.astype(jnp.float32)
    b2_r = b2.reshape(1, HIDDEN).astype(jnp.float32)
    w3_t = jnp.zeros((HIDDEN, LANE), jnp.float32).at[:, :out_size].set(
        w3.T.astype(jnp.float32))
    b3_p = jnp.zeros((1, LANE), jnp.float32).at[:, :out_size].set(
        b3.astype(jnp.float32).reshape(1, -1))

    # Batch tiling: large tiles (default 512 rows), pad B up to a multiple.
    TB = min(tb, _round_up(B, 8))
    B_pad = _round_up(B, TB)
    if B_pad != B:
        h = jnp.pad(h, ((0, B_pad - B), (0, 0)))
    grid = (B_pad // TB,)

    def resident(shape):
        # constant block index -> DMA'd once, reused across all grid steps
        return pl.BlockSpec(shape, lambda i: (0, 0))

    c_pad, out_pad = pl.pallas_call(
        cbm_batch_kernel,
        out_shape=(
            jax.ShapeDtypeStruct((B_pad, LANE), jnp.float32),   # c (lane-padded)
            jax.ShapeDtypeStruct((B_pad, LANE), jnp.float32),   # output (lane-padded)
        ),
        grid=grid,
        in_specs=[
            pl.BlockSpec((TB, IN_FEATS), lambda i: (i, 0)),     # h: streamed
            resident((IN_FEATS, LANE)),                         # sc.weight^T (padded)
            resident((1, LANE)),                                # sc.bias (padded)
            resident((LANE, HIDDEN)),                           # co[0].weight^T (padded)
            resident((1, HIDDEN)),                              # co[0].bias
            resident((HIDDEN, HIDDEN)),                         # co[2].weight^T
            resident((1, HIDDEN)),                              # co[2].bias
            resident((HIDDEN, LANE)),                           # co[4].weight^T (padded)
            resident((1, LANE)),                                # co[4].bias (padded)
        ],
        out_specs=(
            pl.BlockSpec((TB, LANE), lambda i: (i, 0)),
            pl.BlockSpec((TB, LANE), lambda i: (i, 0)),
        ),
        compiler_params=pltpu.CompilerParams(
            dimension_semantics=("parallel",)),
    )(h, wsc_t, bsc_p, w1_t, b1_r, w2_t, b2_r, w3_t, b3_p)

    # Weight-only losses: single tiny call, original (out, in) layout.
    vmem = pl.BlockSpec(memory_space=pltpu.MemorySpace.VMEM)
    l1, div = pl.pallas_call(
        weight_loss_kernel,
        out_shape=(
            jax.ShapeDtypeStruct((1, 1), jnp.float32),
            jax.ShapeDtypeStruct((1, 1), jnp.float32),
        ),
        in_specs=[vmem],
        out_specs=(vmem, vmem),
    )(wsc32)

    c = c_pad[:B, :concept]
    out = out_pad[:B, :out_size]
    return c, out, l1[0, 0], div[0, 0]


def init_params(key, concept_size, output_size):
    """Deterministic PyTorch-Linear-style init (U[-1/sqrt(fan_in), 1/sqrt(fan_in)])."""
    def linear(k, out_f, in_f):
        k1, k2 = jax.random.split(k)
        bound = 1.0 / jnp.sqrt(in_f)
        w = jax.random.uniform(k1, (out_f, in_f), jnp.float32, -bound, bound)
        b = jax.random.uniform(k2, (1, out_f), jnp.float32, -bound, bound)
        return w, b

    ks = jax.random.split(key, 4)
    wsc, bsc = linear(ks[0], concept_size, IN_FEATS)
    w1, b1 = linear(ks[1], HIDDEN, concept_size)
    w2, b2 = linear(ks[2], HIDDEN, HIDDEN)
    w3, b3 = linear(ks[3], output_size, HIDDEN)
    return (wsc, bsc, w1, b1, w2, b2, w3, b3)


def reference_forward(x, params):
    wsc, bsc, w1, b1, w2, b2, w3, b3 = params
    h = human_concepts2(x)
    c = h @ wsc.T + bsc
    x1 = jnp.maximum(c @ w1.T + b1, 0.0)
    x2 = jnp.maximum(x1 @ w2.T + b2, 0.0)
    out = x2 @ w3.T + b3
    l1 = jnp.sum(jnp.abs(wsc))
    nw = wsc / jnp.maximum(jnp.linalg.norm(wsc, axis=1, keepdims=True), 1e-12)
    cs = nw @ nw.T - jnp.eye(wsc.shape[0], dtype=jnp.float32)
    div = jnp.sum(cs * cs)
    return c, out, l1, div


if __name__ == "__main__":
    key = jax.random.PRNGKey(0)
    k_x, k_p = jax.random.split(key)

    # small shapes; batch not a multiple of the tile to exercise the pad path
    batch, concept_size, output_size = 10, 8, 4
    x = jax.random.normal(k_x, (batch, IN_FEATS), jnp.float32)
    params = init_params(k_p, concept_size, output_size)

    c, out, l1, div = jax.block_until_ready(cbm_forward(x, params))

    # correctness check vs pure-JAX reference
    c_r, out_r, l1_r, div_r = reference_forward(x, params)
    assert jnp.allclose(c, c_r, atol=1e-4, rtol=1e-4)
    assert jnp.allclose(out, out_r, atol=1e-4, rtol=1e-4)
    assert jnp.allclose(l1, l1_r, atol=1e-4, rtol=1e-4)
    assert jnp.allclose(div, div_r, atol=1e-4, rtol=1e-4)

    print("KERNEL_OK")
</pallas_src>

<mosaic_0001>
module attributes {stable_mosaic.version = 11 : i64} {
  func.func @weight_loss_kernel(%arg0: memref<8x19xf32, #tpu.memory_space<vmem>>, %arg1: memref<1x1xf32, #tpu.memory_space<vmem>>, %arg2: memref<1x1xf32, #tpu.memory_space<vmem>>) attributes {dimension_semantics = [], scalar_prefetch = 0 : i64, scratch_operands = 0 : i64, tpu.core_type = #tpu.core_type<tc>} {
    %c0 = arith.constant 0 : index
    %c0_0 = arith.constant 0 : index
    %0 = vector.load %arg0[%c0, %c0_0] : memref<8x19xf32, #tpu.memory_space<vmem>>, vector<8x19xf32>
    %1 = math.absf %0 : vector<8x19xf32>
    %2 = vector.shape_cast %1 : vector<8x19xf32> to vector<1x8x19xf32>
    %cst = arith.constant dense<0.000000e+00> : vector<1xf32>
    %3 = vector.multi_reduction <add>, %2, %cst [1, 2] : vector<1x8x19xf32> to vector<1xf32>
    %4 = vector.shape_cast %3 : vector<1xf32> to vector<1x1x1xf32>
    %5 = vector.extract %4[0, 0, 0] : f32 from vector<1x1x1xf32>
    %6 = vector.broadcast %5 : f32 to vector<1x1xf32>
    %c0_1 = arith.constant 0 : index
    %c0_2 = arith.constant 0 : index
    %7 = vector.load %arg1[%c0_1, %c0_2] : memref<1x1xf32, #tpu.memory_space<vmem>>, vector<1x1xf32>
    tpu.vector_store %arg1[%c0_1, %c0_2], %6 {strides = array<i32>} : memref<1x1xf32, #tpu.memory_space<vmem>>, vector<1x1xf32>,
    %8 = arith.mulf %0, %0 : vector<8x19xf32>
    %cst_3 = arith.constant dense<0.000000e+00> : vector<8xf32>
    %9 = vector.multi_reduction <add>, %8, %cst_3 [1] : vector<8x19xf32> to vector<8xf32>
    %10 = vector.shape_cast %9 : vector<8xf32> to vector<8x1xf32>
    %11 = math.sqrt %10 : vector<8x1xf32>
    %cst_4 = arith.constant 9.99999996E-13 : f32
    %12 = vector.broadcast %cst_4 : f32 to vector<8x1xf32>
    %13 = arith.maximumf %11, %12 : vector<8x1xf32>
    %14 = vector.broadcast %13 : vector<8x1xf32> to vector<8x19xf32>
    %15 = arith.divf %0, %14 : vector<8x19xf32>
    %cst_5 = arith.constant dense<0.000000e+00> : vector<8x8xf32>
    %16 = tpu.matmul %15, %15, %cst_5 {dimension_numbers = #tpu.dot_dimension_numbers<[1], [1], [0], [0], [0, 0, 1, 0], [], []>} : vector<8x19xf32>, vector<8x19xf32>, vector<8x8xf32> -> vector<8x8xf32>
    %17 = tpu.iota {dimensions = array<i32: 0>} : vector<8x8xi32>
    %18 = tpu.iota {dimensions = array<i32: 1>} : vector<8x8xi32>
    %19 = arith.cmpi eq, %17, %18 : vector<8x8xi32>
    %20 = arith.extui %19 : vector<8x8xi1> to vector<8x8xi32>
    %21 = arith.sitofp %20 : vector<8x8xi32> to vector<8x8xf32>
    %22 = arith.subf %16, %21 : vector<8x8xf32>
    %23 = arith.mulf %22, %22 : vector<8x8xf32>
    %24 = vector.shape_cast %23 : vector<8x8xf32> to vector<1x8x8xf32>
    %cst_6 = arith.constant dense<0.000000e+00> : vector<1xf32>
    %25 = vector.multi_reduction <add>, %24, %cst_6 [1, 2] : vector<1x8x8xf32> to vector<1xf32>
    %26 = vector.shape_cast %25 : vector<1xf32> to vector<1x1x1xf32>
    %27 = vector.extract %26[0, 0, 0] : f32 from vector<1x1x1xf32>
    %28 = vector.broadcast %27 : f32 to vector<1x1xf32>
    %c0_7 = arith.constant 0 : index
    %c0_8 = arith.constant 0 : index
    %29 = vector.load %arg2[%c0_7, %c0_8] : memref<1x1xf32, #tpu.memory_space<vmem>>, vector<1x1xf32>
    tpu.vector_store %arg2[%c0_7, %c0_8], %28 {strides = array<i32>} : memref<1x1xf32, #tpu.memory_space<vmem>>, vector<1x1xf32>,
    return
  }
}

module attributes {stable_mosaic.version = 11 : i64} {
  func.func @cbm_batch_kernel(%arg0: i32, %arg1: memref<16x19xf32, #tpu.memory_space<vmem>>, %arg2: memref<19x128xf32, #tpu.memory_space<vmem>>, %arg3: memref<1x128xf32, #tpu.memory_space<vmem>>, %arg4: memref<128x64xf32, #tpu.memory_space<vmem>>, %arg5: memref<1x64xf32, #tpu.memory_space<vmem>>, %arg6: memref<64x64xf32, #tpu.memory_space<vmem>>, %arg7: memref<1x64xf32, #tpu.memory_space<vmem>>, %arg8: memref<64x128xf32, #tpu.memory_space<vmem>>, %arg9: memref<1x128xf32, #tpu.memory_space<vmem>>, %arg10: memref<16x128xf32, #tpu.memory_space<vmem>>, %arg11: memref<16x128xf32, #tpu.memory_space<vmem>>) attributes {dimension_semantics = [#tpu.dimension_semantics<parallel>], iteration_bounds = array<i64: 1>, scalar_prefetch = 0 : i64, scratch_operands = 0 : i64, tpu.core_type = #tpu.core_type<tc>, window_params = [{transform_indices = @transform_0, window_bounds = array<i64: 16, 19>}, {pipeline_mode = #tpu.pipeline_mode<synchronous>, transform_indices = @transform_1, window_bounds = array<i64: 19, 128>}, {pipeline_mode = #tpu.pipeline_mode<synchronous>, transform_indices = @transform_2, window_bounds = array<i64: 1, 128>}, {pipeline_mode = #tpu.pipeline_mode<synchronous>, transform_indices = @transform_3, window_bounds = array<i64: 128, 64>}, {pipeline_mode = #tpu.pipeline_mode<synchronous>, transform_indices = @transform_4, window_bounds = array<i64: 1, 64>}, {pipeline_mode = #tpu.pipeline_mode<synchronous>, transform_indices = @transform_5, window_bounds = array<i64: 64, 64>}, {pipeline_mode = #tpu.pipeline_mode<synchronous>, transform_indices = @transform_6, window_bounds = array<i64: 1, 64>}, {pipeline_mode = #tpu.pipeline_mode<synchronous>, transform_indices = @transform_7, window_bounds = array<i64: 64, 128>}, {pipeline_mode = #tpu.pipeline_mode<synchronous>, transform_indices = @transform_8, window_bounds = array<i64: 1, 128>}, {transform_indices = @transform_9, window_bounds = array<i64: 16, 128>}, {transform_indices = @transform_10, window_bounds = array<i64: 16, 128>}]} {
    %c0 = arith.constant 0 : index
    %c0_0 = arith.constant 0 : index
    %0 = vector.load %arg1[%c0, %c0_0] : memref<16x19xf32, #tpu.memory_space<vmem>>, vector<16x19xf32>
    %c0_1 = arith.constant 0 : index
    %c0_2 = arith.constant 0 : index
    %1 = vector.load %arg2[%c0_1, %c0_2] : memref<19x128xf32, #tpu.memory_space<vmem>>, vector<19x128xf32>
    %cst = arith.constant dense<0.000000e+00> : vector<16x128xf32>
    %2 = tpu.matmul %0, %1, %cst {dimension_numbers = #tpu.dot_dimension_numbers<[1], [0], [0], [1], [0, 0, 1, 1], [], []>} : vector<16x19xf32>, vector<19x128xf32>, vector<16x128xf32> -> vector<16x128xf32>
    %c0_3 = arith.constant 0 : index
    %c0_4 = arith.constant 0 : index
    %3 = vector.load %arg3[%c0_3, %c0_4] : memref<1x128xf32, #tpu.memory_space<vmem>>, vector<1x128xf32>
    %4 = vector.broadcast %3 : vector<1x128xf32> to vector<16x128xf32>
    %5 = arith.addf %2, %4 : vector<16x128xf32>
    %c0_5 = arith.constant 0 : index
    %c0_6 = arith.constant 0 : index
    %6 = vector.load %arg10[%c0_5, %c0_6] : memref<16x128xf32, #tpu.memory_space<vmem>>, vector<16x128xf32>
    tpu.vector_store %arg10[%c0_5, %c0_6], %5 {strides = array<i32>} : memref<16x128xf32, #tpu.memory_space<vmem>>, vector<16x128xf32>,
    %c0_7 = arith.constant 0 : index
    %c0_8 = arith.constant 0 : index
    %7 = vector.load %arg4[%c0_7, %c0_8] : memref<128x64xf32, #tpu.memory_space<vmem>>, vector<128x64xf32>
    %cst_9 = arith.constant dense<0.000000e+00> : vector<16x64xf32>
    %8 = tpu.matmul %5, %7, %cst_9 {dimension_numbers = #tpu.dot_dimension_numbers<[1], [0], [0], [1], [0, 0, 1, 1], [], []>} : vector<16x128xf32>, vector<128x64xf32>, vector<16x64xf32> -> vector<16x64xf32>
    %c0_10 = arith.constant 0 : index
    %c0_11 = arith.constant 0 : index
    %9 = vector.load %arg5[%c0_10, %c0_11] : memref<1x64xf32, #tpu.memory_space<vmem>>, vector<1x64xf32>
    %10 = vector.broadcast %9 : vector<1x64xf32> to vector<16x64xf32>
    %11 = arith.addf %8, %10 : vector<16x64xf32>
    %cst_12 = arith.constant 0.000000e+00 : f32
    %12 = vector.broadcast %cst_12 : f32 to vector<16x64xf32>
    %13 = arith.maximumf %11, %12 : vector<16x64xf32>
    %c0_13 = arith.constant 0 : index
    %c0_14 = arith.constant 0 : index
    %14 = vector.load %arg6[%c0_13, %c0_14] : memref<64x64xf32, #tpu.memory_space<vmem>>, vector<64x64xf32>
    %cst_15 = arith.constant dense<0.000000e+00> : vector<16x64xf32>
    %15 = tpu.matmul %13, %14, %cst_15 {dimension_numbers = #tpu.dot_dimension_numbers<[1], [0], [0], [1], [0, 0, 1, 1], [], []>} : vector<16x64xf32>, vector<64x64xf32>, vector<16x64xf32> -> vector<16x64xf32>
    %c0_16 = arith.constant 0 : index
    %c0_17 = arith.constant 0 : index
    %16 = vector.load %arg7[%c0_16, %c0_17] : memref<1x64xf32, #tpu.memory_space<vmem>>, vector<1x64xf32>
    %17 = vector.broadcast %16 : vector<1x64xf32> to vector<16x64xf32>
    %18 = arith.addf %15, %17 : vector<16x64xf32>
    %cst_18 = arith.constant 0.000000e+00 : f32
    %19 = vector.broadcast %cst_18 : f32 to vector<16x64xf32>
    %20 = arith.maximumf %18, %19 : vector<16x64xf32>
    %c0_19 = arith.constant 0 : index
    %c0_20 = arith.constant 0 : index
    %21 = vector.load %arg8[%c0_19, %c0_20] : memref<64x128xf32, #tpu.memory_space<vmem>>, vector<64x128xf32>
    %cst_21 = arith.constant dense<0.000000e+00> : vector<16x128xf32>
    %22 = tpu.matmul %20, %21, %cst_21 {dimension_numbers = #tpu.dot_dimension_numbers<[1], [0], [0], [1], [0, 0, 1, 1], [], []>} : vector<16x64xf32>, vector<64x128xf32>, vector<16x128xf32> -> vector<16x128xf32>
    %c0_22 = arith.constant 0 : index
    %c0_23 = arith.constant 0 : index
    %23 = vector.load %arg9[%c0_22, %c0_23] : memref<1x128xf32, #tpu.memory_space<vmem>>, vector<1x128xf32>
    %24 = vector.broadcast %23 : vector<1x128xf32> to vector<16x128xf32>
    %25 = arith.addf %22, %24 : vector<16x128xf32>
    %c0_24 = arith.constant 0 : index
    %c0_25 = arith.constant 0 : index
    %26 = vector.load %arg11[%c0_24, %c0_25] : memref<16x128xf32, #tpu.memory_space<vmem>>, vector<16x128xf32>
    tpu.vector_store %arg11[%c0_24, %c0_25], %25 {strides = array<i32>} : memref<16x128xf32, #tpu.memory_space<vmem>>, vector<16x128xf32>,
    return
  }
  func.func @transform_0(%arg0: i32) -> (i32, i32) {
    %c0_i32 = arith.constant 0 : i32
    %c0_i32_0 = arith.constant 0 : i32
    return %arg0, %c0_i32 : i32, i32
  }
  func.func @transform_1(%arg0: i32) -> (i32, i32) {
    %c0_i32 = arith.constant 0 : i32
    %c0_i32_0 = arith.constant 0 : i32
    %c0_i32_1 = arith.constant 0 : i32
    return %c0_i32, %c0_i32_0 : i32, i32
  }
  func.func @transform_2(%arg0: i32) -> (i32, i32) {
    %c0_i32 = arith.constant 0 : i32
    %c0_i32_0 = arith.constant 0 : i32
    %c0_i32_1 = arith.constant 0 : i32
    return %c0_i32, %c0_i32_0 : i32, i32
  }
  func.func @transform_3(%arg0: i32) -> (i32, i32) {
    %c0_i32 = arith.constant 0 : i32
    %c0_i32_0 = arith.constant 0 : i32
    %c0_i32_1 = arith.constant 0 : i32
    return %c0_i32, %c0_i32_0 : i32, i32
  }
  func.func @transform_4(%arg0: i32) -> (i32, i32) {
    %c0_i32 = arith.constant 0 : i32
    %c0_i32_0 = arith.constant 0 : i32
    %c0_i32_1 = arith.constant 0 : i32
    return %c0_i32, %c0_i32_0 : i32, i32
  }
  func.func @transform_5(%arg0: i32) -> (i32, i32) {
    %c0_i32 = arith.constant 0 : i32
    %c0_i32_0 = arith.constant 0 : i32
    %c0_i32_1 = arith.constant 0 : i32
    return %c0_i32, %c0_i32_0 : i32, i32
  }
  func.func @transform_6(%arg0: i32) -> (i32, i32) {
    %c0_i32 = arith.constant 0 : i32
    %c0_i32_0 = arith.constant 0 : i32
    %c0_i32_1 = arith.constant 0 : i32
    return %c0_i32, %c0_i32_0 : i32, i32
  }
  func.func @transform_7(%arg0: i32) -> (i32, i32) {
    %c0_i32 = arith.constant 0 : i32
    %c0_i32_0 = arith.constant 0 : i32
    %c0_i32_1 = arith.constant 0 : i32
    return %c0_i32, %c0_i32_0 : i32, i32
  }
  func.func @transform_8(%arg0: i32) -> (i32, i32) {
    %c0_i32 = arith.constant 0 : i32
    %c0_i32_0 = arith.constant 0 : i32
    %c0_i32_1 = arith.constant 0 : i32
    return %c0_i32, %c0_i32_0 : i32, i32
  }
  func.func @transform_9(%arg0: i32) -> (i32, i32) {
    %c0_i32 = arith.constant 0 : i32
    %c0_i32_0 = arith.constant 0 : i32
    return %arg0, %c0_i32 : i32, i32
  }
  func.func @transform_10(%arg0: i32) -> (i32, i32) {
    %c0_i32 = arith.constant 0 : i32
    %c0_i32_0 = arith.constant 0 : i32
    return %arg0, %c0_i32 : i32, i32
  }
}

</mosaic_0001>

<bundles_post_ra>
// kernel: cbm_forward.3
= control target key start
LH: loop header
LB: loop body
LE: loop exit
PB: predicated region body
PF: predicated region fallthrough
CT: control target
= control target key end

     0   :  { %8 = vsyncpa [#allocation3], 0  ;;  %vm14_vm0 = vcmask 154624   ;;  %s265_s0 = inlined_call_operand.vmem [shape: f32[8,19], index: 0, kind: input, shape index: {}]   ;;  %s266_s1 = inlined_call_operand.hbm [shape: f32[1,1], index: 1, kind: output, shape index: {0}]   ;;  %s267_s2 = inlined_call_operand.hbm [shape: f32[1,1], index: 2, kind: output, shape index: {1}]  }
   0x1   :  { %v12_v0 = vld [vmem:[%s265_s0] sm:$0xff] }
   0x2   :  { %9 = vsyncpa [#allocation5], 0  ;;  %v28_v1 = vmul.f32 %v12_v0, %v12_v0  ;;  %v231_v3 = vmov 0.0   ;;  %vm232_vm1 = vmmov 0   ;;  %v13_v13 = vand.u32 2147483647, %v12_v0 }
   0x3   :  { %170 = vmatprep.subr.mxu0 %v231_v3  ;;  %172 = vmatprep.mubr.msk.f32.mxu0 %vm232_vm1, %v231_v3  ;;  %v115_v15 = vlaneseq  ;;  %vm124_vm5 = vcmask 64512   ;;  %vm26_vm6 = vcmask 0   ;;  %s233_s11 = smov [#allocation2]  }
   0x4   :  { %v29_v2 = vsel %vm14_vm0, %v28_v1, 0.0  ;;  %v15_v14 = vsel %vm14_vm0, %v13_v13, 0.0  ;;  %s143_s12 = sshll.u32 %s233_s11, 4  ;;  %s144_s12 = int_to_ptr.vmem [resolvable:$true] %s143_s12 }
   0x5   :  { %30 = vadd.xlane.f32.xlu0 %v29_v2  ;;  %v116_v16 = vshrl.u32 %v115_v15, 7  ;;  %v118_v17 = vand.u32 127, %v115_v15  ;;  %s187_s13 = scalar_lea.vmem %s144_s12, 16  ;;  %s191_s14 = scalar_lea.vmem %s144_s12, 32 }
   0x6   :  { %p188_p0 = scmp.ne.s32.totalorder %s144_s12, %s187_s13  ;;  %p192_p1 = scmp.lt.s32.totalorder %s144_s12, %s144_s12 }
   0x7   :  { %vm119_vm4 = vcmp.eq.s32.totalorder %v116_v16, %v118_v17  ;;  %p193_p2 = scmp.lt.s32.totalorder %s191_s14, %s187_s13 }
   0x8   :  { %v167_v18 = vsel %vm119_vm4, 1.0, %v231_v3 }
   0x9   :  { %16 = vadd.xlane.f32.xlu0 %v15_v14  ;;  %p194_p3 = por %p193_p2, %p192_p1 }
   0xb   :  { %p195_p4 = pnand %p194_p3, %p188_p0 }
  0x8e   :  { %v31_v4 = vpop.xlane.xlu0 %30 }
  0x8f   :  { %183 = vrsqrt.f32 %v31_v4  ;;  %vm34_vm2 = vcmp.eq.f32.partialorder %v31_v4, inf  ;;  %v37_v7 = vand.u32 2147483648, %v31_v4  ;;  %vm36_vm3 = vcmp.eq.f32.partialorder %v31_v4, 0.0 }
  0x92   :  { %v17_v24 = vpop.xlane.xlu0 %16 }
  0x93   :  { %v18_v25 = vrot.slane %v17_v24, 4 }
  0x95   :  { %v19_v26 = vadd.f32 %v18_v25, %v17_v24 }
  0x97   :  { %v20_v27 = vrot.slane %v19_v26, 2 }
  0x99   :  { %v21_v28 = vadd.f32 %v20_v27, %v19_v26 }
  0x9b   :  { %v22_v29 = vrot.slane %v21_v28, 1 }
  0x9c   :  { %v184_v5 = vpop.eup %183 }
  0x9d   :  { %v33_v6 = vmul.f32 %v184_v5, %v31_v4  ;;  %v23_v30 = vadd.f32 %v22_v29, %v21_v28 }
  0x9f   :  { %v35_v8 = vsel %vm34_vm2, %v31_v4, %v33_v6  ;;  %175 = vpush %v23_v30 }
  0xa0   :  { %v38_v9 = vsel %vm36_vm3, %v37_v7, %v35_v8 }
  0xa1   :  { %v39_v10 = vmax.f32 %v38_v9, 1e-12 }
  0xa3   :  { %185 = vrcp.f32 %v39_v10 }
  0xb0   :  { %v186_v11 = vpop.eup %185 }
  0xb1   :  { %v41_v12 = vmul.f32 %v186_v11, %v12_v0 }
  0xb3   :  { %171 = vmatpush3.xpose.msk.msra.mxu0 %vm14_vm0, %v41_v12 }
  0xb6   :  { %173 = vmatmul.mubr.msk.f32.vlgmr.msra.gmra.mxu0 %vm14_vm0, %v41_v12 }
  0xd0   :  { %s176_s0 = spop %175 }
  0xd1   :  { %v25_v31 = vstv %s176_s0 }
  0xd2   :  { %27 = vst.msk [vmem:[#allocation2] sm:$0x1] %vm26_vm6, %v25_v31 }
 0x176   :  { %v111_v19 = vpop.f32.mrf.mxu0 }
 0x177   :  { %v122_v20 = vsub.f32 %v111_v19, %v167_v18 }
 0x178   :  { %v174_v21 = vpop.f32.mrf.mxu0 }
 0x179   :  { %v123_v22 = vmul.f32 %v122_v20, %v122_v20 }
 0x17b   :  { %v125_v23 = vsel %vm124_vm5, %v123_v22, 0.0 }
 0x17c   :  { %126 = vadd.xlane.f32.xlu1 %v125_v23 }
 0x17d   :  { %198 = shalt.err (!%p195_p4)
}
 0x17e   :  { %146 = dma.vmem_to_hbm [thread:$0]  %s144_s12, 16, %s266_s1, [#allocation3]  }
 0x17f   :  { %s234_s17 = smov [#allocation4]  }
 0x180   :  { %s153_s18 = sshll.u32 %s234_s17, 4  ;;  %s154_s18 = int_to_ptr.vmem [resolvable:$true] %s153_s18 }
 0x181   :  { %s207_s20 = scalar_lea.vmem %s154_s18, 16  ;;  %s211_s21 = scalar_lea.vmem %s154_s18, 32 }
 0x182   :  { %p208_p5 = scmp.ne.s32.totalorder %s154_s18, %s207_s20  ;;  %p212_p6 = scmp.lt.s32.totalorder %s154_s18, %s154_s18 }
 0x183   :  { %p213_p7 = scmp.lt.s32.totalorder %s211_s21, %s207_s20 }
 0x185   :  { %p214_p8 = por %p213_p7, %p212_p6 }
 0x187   :  { %p215_p9 = pnand %p214_p8, %p208_p5 }
 0x205   :  { %v127_v32 = vpop.xlane.xlu1 %126 }
 0x206   :  { %v128_v33 = vrot.slane %v127_v32, 4 }
 0x208   :  { %v129_v34 = vadd.f32 %v128_v33, %v127_v32 }
 0x20a   :  { %v130_v35 = vrot.slane %v129_v34, 2 }
 0x20c   :  { %v131_v36 = vadd.f32 %v130_v35, %v129_v34 }
 0x20e   :  { %v132_v37 = vrot.slane %v131_v36, 1 }
 0x210   :  { %v133_v38 = vadd.f32 %v132_v37, %v131_v36 }
 0x212   :  { %177 = vpush %v133_v38 }
 0x243   :  { %s178_s19 = spop %177 }
 0x244   :  { %v135_v39 = vstv %s178_s19 }
 0x245   :  { %136 = vst.msk [vmem:[#allocation4] sm:$0x1] %vm26_vm6, %v135_v39 }
 0x246   :  { %218 = shalt.err (!%p215_p9)
}
 0x247   :  { %156 = dma.vmem_to_hbm [thread:$0]  %s154_s18, 16, %s267_s2, [#allocation5]  }
 0x248   :  { %227 = dma.done.wait [#allocation3], 16  }
 0x249   :  { %228 = vsyncadd [#allocation3], 4294967280 }
 0x24a   :  { %229 = dma.done.wait [#allocation5], 16  }
 0x24b   :  { %230 = vsyncadd [#allocation5], 4294967280 }
 0x24c   :  { %163 = vsyncpa [#allocation3], 1 }
 0x24d   :  { %164 = vsyncpa [#allocation5], 1 }

// kernel: cbm_forward.2
= control target key start
LH: loop header
LB: loop body
LE: loop exit
PB: predicated region body
PF: predicated region fallthrough
CT: control target
= control target key end

     0   :  { %vm53_vm0 = vcmask 1042432   ;;  %vm46_vm1 = vcmask 154624   ;;  %vm249_vm2 = vcmask 523264   ;;  %s771_s1 = inlined_call_operand.vmem [shape: f32[19,128], index: 1, kind: input, shape index: {}]   ;;  %s772_s0 = inlined_call_operand.vmem [shape: f32[16,19], index: 0, kind: input, shape index: {}]   ;;  %s773_s3 = inlined_call_operand.vmem [shape: f32[128,64], index: 3, kind: input, shape index: {}]   ;;  %s774_s5 = inlined_call_operand.vmem [shape: f32[64,64], index: 5, kind: input, shape index: {}]   ;;  %s775_s2 = inlined_call_operand.vmem [shape: f32[1,128], index: 2, kind: input, shape index: {}]   ;;  %s776_s9 = inlined_call_operand.vmem [shape: f32[16,128], index: 9, kind: output, shape index: {0}]   ;;  %s777_s7 = inlined_call_operand.vmem [shape: f32[64,128], index: 7, kind: input, shape index: {}]   ;;  %s778_s4 = inlined_call_operand.vmem [shape: f32[1,64], index: 4, kind: input, shape index: {}]   ;;  %s779_s6 = inlined_call_operand.vmem [shape: f32[1,64], index: 6, kind: input, shape index: {}]   ;;  %s780_s8 = inlined_call_operand.vmem [shape: f32[1,128], index: 8, kind: input, shape index: {}]   ;;  %s781_s10 = inlined_call_operand.vmem [shape: f32[16,128], index: 10, kind: output, shape index: {1}]  }
   0x1   :  { %v38_v0 = vld [vmem:[%s771_s1 + $0x10] sm:$0x7]  ;;  %v37_v1 = vld [vmem:[%s771_s1 + $0x8] sm:$0xff]  ;;  %v34_v2 = vld [vmem:[%s772_s0] sm:$0xff] }
   0x2   :  { %493 = vmatprep.subr.msk.mxu0 %vm53_vm0, %v38_v0  ;;  %v149_v3 = vld [vmem:[%s773_s3 + $0x78] sm:$0xff]  ;;  %v36_v4 = vld [vmem:[%s771_s1] sm:$0xff]  ;;  %499 = vmatprep.mubr.msk.f32.mxu0 %vm46_vm1, %v34_v2  ;;  %v148_v5 = vld [vmem:[%s773_s3 + $0x70] sm:$0xff] }
   0x3   :  { %494 = vmatpush3.msk.msra.mxu0 %vm53_vm0, %v38_v0  ;;  %502 = vmatprep.subr.mxu1 %v149_v3  ;;  %v35_v6 = vld [vmem:[%s772_s0 + $0x8] sm:$0xff]  ;;  %v146_v8 = vld [vmem:[%s773_s3 + $0x60] sm:$0xff]  ;;  %v145_v9 = vld [vmem:[%s773_s3 + $0x58] sm:$0xff] }
   0x4   :  { %495 = vmatprep.subr.mxu0 %v37_v1  ;;  %503 = vmatpush3.msra.mxu1 %v149_v3  ;;  %v147_v7 = vld [vmem:[%s773_s3 + $0x68] sm:$0xff]  ;;  %v144_v10 = vld [vmem:[%s773_s3 + $0x50] sm:$0xff]  ;;  %v142_v12 = vld [vmem:[%s773_s3 + $0x40] sm:$0xff] }
   0x5   :  { %496 = vmatpush3.msra.mxu0 %v37_v1  ;;  %504 = vmatprep.subr.mxu1 %v148_v5  ;;  %v143_v11 = vld [vmem:[%s773_s3 + $0x48] sm:$0xff]  ;;  %v141_v13 = vld [vmem:[%s773_s3 + $0x38] sm:$0xff]  ;;  %v140_v14 = vld [vmem:[%s773_s3 + $0x30] sm:$0xff] }
   0x6   :  { %497 = vmatprep.subr.mxu0 %v36_v4  ;;  %505 = vmatpush3.msra.mxu1 %v148_v5  ;;  %v139_v15 = vld [vmem:[%s773_s3 + $0x28] sm:$0xff]  ;;  %v138_v16 = vld [vmem:[%s773_s3 + $0x20] sm:$0xff]  ;;  %v137_v17 = vld [vmem:[%s773_s3 + $0x18] sm:$0xff] }
   0x7   :  { %498 = vmatpush3.msra.mxu0 %v36_v4  ;;  %506 = vmatprep.subr.mxu1 %v147_v7  ;;  %v136_v18 = vld [vmem:[%s773_s3 + $0x10] sm:$0xff]  ;;  %v135_v19 = vld [vmem:[%s773_s3 + $0x8] sm:$0xff]  ;;  %v134_v20 = vld [vmem:[%s773_s3] sm:$0xff] }
   0x8   :  { %500 = vmatmul.mubr.msk.f32.vlgmr.msra.gmra.mxu0 %vm46_vm1, %v35_v6  ;;  %507 = vmatpush3.msra.mxu1 %v147_v7  ;;  %v241_v21 = vld [vmem:[%s774_s5 + $0x38] sm:$0xff]  ;;  %v240_v22 = vld [vmem:[%s774_s5 + $0x30] sm:$0xff]  ;;  %v239_v23 = vld [vmem:[%s774_s5 + $0x28] sm:$0xff] }
   0x9   :  { %508 = vmatprep.subr.mxu1 %v146_v8  ;;  %537 = vmatprep.subr.mxu0 %v241_v21  ;;  %v238_v24 = vld [vmem:[%s774_s5 + $0x20] sm:$0xff]  ;;  %v237_v30 = vld [vmem:[%s774_s5 + $0x18] sm:$0xff]  ;;  %v236_v31 = vld [vmem:[%s774_s5 + $0x10] sm:$0xff] }
   0xa   :  { %509 = vmatpush3.msra.mxu1 %v146_v8  ;;  %538 = vmatpush3.msra.mxu0 %v241_v21  ;;  %v439_v25 = vld [vmem:[%s775_s2] ss:$0 sm:$0xff]  ;;  %v235_v32 = vld [vmem:[%s774_s5 + $0x8] sm:$0xff]  ;;  %v340_v34 = vld [vmem:[%s777_s7 + $0x38] sm:$0xff] }
   0xb   :  { %510 = vmatprep.subr.mxu1 %v145_v9  ;;  %539 = vmatprep.subr.mxu0 %v240_v22  ;;  %v234_v33 = vld [vmem:[%s774_s5] sm:$0xff]  ;;  %v339_v42 = vld [vmem:[%s777_s7 + $0x30] sm:$0xff]  ;;  %v338_v43 = vld [vmem:[%s777_s7 + $0x28] sm:$0xff] }
   0xc   :  { %511 = vmatpush3.msra.mxu1 %v145_v9  ;;  %540 = vmatpush3.msra.mxu0 %v240_v22  ;;  %v443_v35 = vld [vmem:[%s778_s4] ss:$0 sm:$0xff]  ;;  %v336_v45 = vld [vmem:[%s777_s7 + $0x18] sm:$0xff]  ;;  %v335_v46 = vld [vmem:[%s777_s7 + $0x10] sm:$0xff] }
   0xd   :  { %512 = vmatprep.subr.mxu1 %v144_v10  ;;  %541 = vmatprep.subr.mxu0 %v239_v23  ;;  %v337_v44 = vld [vmem:[%s777_s7 + $0x20] sm:$0xff]  ;;  %v334_v47 = vld [vmem:[%s777_s7 + $0x8] sm:$0xff] }
   0xe   :  { %513 = vmatpush3.msra.mxu1 %v144_v10  ;;  %542 = vmatpush3.msra.mxu0 %v239_v23  ;;  %v333_v48 = vld [vmem:[%s777_s7] sm:$0xff] }
   0xf   :  { %514 = vmatprep.subr.mxu1 %v143_v11  ;;  %543 = vmatprep.subr.mxu0 %v238_v24  ;;  %v444_v49 = vld [vmem:[%s779_s6] ss:$0 sm:$0xff] }
  0x10   :  { %515 = vmatpush3.msra.mxu1 %v143_v11  ;;  %544 = vmatpush3.msra.mxu0 %v238_v24  ;;  %v447_v56 = vld [vmem:[%s780_s8] ss:$0 sm:$0xff] }
  0x11   :  { %516 = vmatprep.subr.mxu1 %v142_v12  ;;  %545 = vmatprep.subr.mxu0 %v237_v30 }
  0x12   :  { %517 = vmatpush3.msra.mxu1 %v142_v12  ;;  %546 = vmatpush3.msra.mxu0 %v237_v30 }
  0x13   :  { %518 = vmatprep.subr.mxu1 %v141_v13  ;;  %547 = vmatprep.subr.mxu0 %v236_v31 }
  0x14   :  { %519 = vmatpush3.msra.mxu1 %v141_v13  ;;  %548 = vmatpush3.msra.mxu0 %v236_v31 }
  0x15   :  { %520 = vmatprep.subr.mxu1 %v140_v14  ;;  %549 = vmatprep.subr.mxu0 %v235_v32 }
  0x16   :  { %521 = vmatpush3.msra.mxu1 %v140_v14  ;;  %550 = vmatpush3.msra.mxu0 %v235_v32 }
  0x17   :  { %522 = vmatprep.subr.mxu1 %v139_v15  ;;  %551 = vmatprep.subr.mxu0 %v234_v33 }
  0x18   :  { %523 = vmatpush3.msra.mxu1 %v139_v15  ;;  %552 = vmatpush3.msra.mxu0 %v234_v33 }
  0x19   :  { %524 = vmatprep.subr.mxu1 %v138_v16  ;;  %556 = vmatprep.subr.mxu0 %v340_v34 }
  0x1a   :  { %525 = vmatpush3.msra.mxu1 %v138_v16 }
  0x1b   :  { %526 = vmatprep.subr.mxu1 %v137_v17 }
  0x1c   :  { %527 = vmatpush3.msra.mxu1 %v137_v17 }
  0x1d   :  { %528 = vmatprep.subr.mxu1 %v136_v18 }
  0x1e   :  { %529 = vmatpush3.msra.mxu1 %v136_v18 }
  0x1f   :  { %530 = vmatprep.subr.mxu1 %v135_v19 }
  0x20   :  { %531 = vmatpush3.msra.mxu1 %v135_v19 }
  0x21   :  { %532 = vmatprep.subr.mxu1 %v134_v20 }
  0x22   :  { %533 = vmatpush3.msra.mxu1 %v134_v20 }
  0xc8   :  { %v501_v26 = vpop.f32.mrf.mxu0 }
  0xc9   :  { %v129_v27 = vadd.f32 %v501_v26, %v439_v25 }
  0xca   :  { %v123_v28 = vpop.f32.mrf.mxu0 }
  0xcb   :  { %133 = vst [vmem:[%s776_s9 + $0x8] sm:$0xff] %v129_v27  ;;  %v124_v29 = vadd.f32 %v439_v25, %v123_v28 }
  0xcd   :  { %132 = vst [vmem:[%s776_s9] sm:$0xff] %v124_v29  ;;  %534 = vmatprep.mubr.f32.mxu1 %v124_v29 }
  0xce   :  { %535 = vmatmul.mubr.f32.vlgmr.msra.gmra.mxu1 %v129_v27 }
 0x18e   :  { %v536_v36 = vpop.f32.mrf.mxu1 }
 0x18f   :  { %v229_v37 = vadd.f32 %v536_v36, %v443_v35 }
 0x190   :  { %v223_v38 = vpop.f32.mrf.mxu1 }
 0x191   :  { %v224_v39 = vadd.f32 %v443_v35, %v223_v38  ;;  %v233_v41 = vmax.f32 %v229_v37, 0.0 }
 0x193   :  { %v232_v40 = vmax.f32 %v224_v39, 0.0 }
 0x195   :  { %553 = vmatprep.mubr.msk.f32.mxu0 %vm249_vm2, %v232_v40 }
 0x196   :  { %554 = vmatmul.mubr.msk.f32.vlgmr.msra.gmra.mxu0 %vm249_vm2, %v233_v41 }
 0x197   :  { %557 = vmatpush3.msra.mxu0 %v340_v34 }
 0x198   :  { %558 = vmatprep.subr.mxu0 %v339_v42 }
 0x199   :  { %559 = vmatpush3.msra.mxu0 %v339_v42 }
 0x19a   :  { %560 = vmatprep.subr.mxu0 %v338_v43 }
 0x19b   :  { %561 = vmatpush3.msra.mxu0 %v338_v43 }
 0x19c   :  { %562 = vmatprep.subr.mxu0 %v337_v44 }
 0x19d   :  { %563 = vmatpush3.msra.mxu0 %v337_v44 }
 0x19e   :  { %564 = vmatprep.subr.mxu0 %v336_v45 }
 0x19f   :  { %565 = vmatpush3.msra.mxu0 %v336_v45 }
 0x1a0   :  { %566 = vmatprep.subr.mxu0 %v335_v46 }
 0x1a1   :  { %567 = vmatpush3.msra.mxu0 %v335_v46 }
 0x1a2   :  { %568 = vmatprep.subr.mxu0 %v334_v47 }
 0x1a3   :  { %569 = vmatpush3.msra.mxu0 %v334_v47 }
 0x1a4   :  { %570 = vmatprep.subr.mxu0 %v333_v48 }
 0x1a5   :  { %571 = vmatpush3.msra.mxu0 %v333_v48 }
 0x256   :  { %v555_v50 = vpop.f32.mrf.mxu0 }
 0x257   :  { %v328_v51 = vadd.f32 %v555_v50, %v444_v49 }
 0x258   :  { %v322_v52 = vpop.f32.mrf.mxu0 }
 0x259   :  { %v323_v53 = vadd.f32 %v444_v49, %v322_v52  ;;  %v332_v55 = vmax.f32 %v328_v51, 0.0 }
 0x25b   :  { %v331_v54 = vmax.f32 %v323_v53, 0.0 }
 0x25d   :  { %572 = vmatprep.mubr.msk.f32.mxu0 %vm249_vm2, %v331_v54 }
 0x25e   :  { %573 = vmatmul.mubr.msk.f32.vlgmr.msra.gmra.mxu0 %vm249_vm2, %v332_v55 }
 0x31e   :  { %v574_v57 = vpop.f32.mrf.mxu0 }
 0x31f   :  { %v426_v58 = vadd.f32 %v574_v57, %v447_v56 }
 0x320   :  { %v420_v59 = vpop.f32.mrf.mxu0 }
 0x321   :  { %430 = vst [vmem:[%s781_s10 + $0x8] sm:$0xff] %v426_v58  ;;  %v421_v60 = vadd.f32 %v447_v56, %v420_v59 }
 0x323   :  { %429 = vst [vmem:[%s781_s10] sm:$0xff] %v421_v60 }

</bundles_post_ra>
